<compile_context>
chip_gen: v5e
topology: v5e:2x2
jax: 0.10.0
libtpu: 0.0.40
codegen_flags: <defaults>
</compile_context>

<pallas_src>
import functools

import jax
import jax.numpy as jnp
from jax.experimental import pallas as pl
from jax.experimental.pallas import tpu as pltpu

EPS = 1e-5  # nn.BatchNorm1d default eps


# --------------------------------------------------------------------------
# Kernel: 3 MXU matmuls + 2 ReLUs per batch tile (BN already folded).
# --------------------------------------------------------------------------
def task_head_kernel(x_ref, w1_ref, b1_ref, w2_ref, b2_ref, w3_ref, b3_ref,
                     o_ref):
    x = x_ref[...].astype(jnp.float32)

    h = jnp.dot(x, w1_ref[...], preferred_element_type=jnp.float32) + b1_ref[...]
    h = jnp.maximum(h, 0.0)                                   # ReLU (VPU)

    h = jnp.dot(h, w2_ref[...], preferred_element_type=jnp.float32) + b2_ref[...]
    h = jnp.maximum(h, 0.0)

    out = jnp.dot(h, w3_ref[...], preferred_element_type=jnp.float32) + b3_ref[...]
    o_ref[...] = out.astype(o_ref.dtype)


# --------------------------------------------------------------------------
# Parameter construction (PyTorch-module-shaped, weights pre-transposed) and
# offline BN folding.
# --------------------------------------------------------------------------
def init_task_head_params(key, input_dim, output_dim, hidden_dims=(64, 32),
                          dtype=jnp.float32):
    """Raw params per hidden block: W (in,out), b, gamma, beta, mean, var;
    then final W, b.  Per-feature vectors are (1, dim) for broadcasting."""
    params = []
    prev = input_dim
    for h in hidden_dims:
        key, kw, kb, kg, kbe, km, kv = jax.random.split(key, 7)
        params += [
            jax.random.normal(kw, (prev, h), dtype) * 0.1,            # W
            jax.random.normal(kb, (1, h), dtype) * 0.1,               # b
            1.0 + 0.1 * jax.random.normal(kg, (1, h), dtype),         # gamma
            0.1 * jax.random.normal(kbe, (1, h), dtype),              # beta
            0.1 * jax.random.normal(km, (1, h), dtype),               # running_mean
            1.0 + 0.1 * jnp.abs(jax.random.normal(kv, (1, h), dtype)),# running_var
        ]
        prev = h
    key, kw, kb = jax.random.split(key, 3)
    params += [
        jax.random.normal(kw, (prev, output_dim), dtype) * 0.1,       # final W
        jax.random.normal(kb, (1, output_dim), dtype) * 0.1,          # final b
    ]
    return params


def fold_batchnorm(params):
    """Fold eval-mode BN into the *following* Linear (done once, offline).

    relu(h)*a + c  with  a = gamma*rsqrt(var+eps), c = beta - mean*a
    then (y @ W + b) = relu(h) @ (a[:,None]*W) + (c @ W + b).
    Returns [W1, b1, W2', b2', W3', b3'] in float32.
    """
    w1, b1, g1, be1, m1, v1, w2, b2, g2, be2, m2, v2, w3, b3 = [
        p.astype(jnp.float32) for p in params]

    a1 = g1 * jax.lax.rsqrt(v1 + EPS)          # (1, h1)
    c1 = be1 - m1 * a1
    w2f = a1.T * w2                            # (h1, 1) * (h1, h2)
    b2f = c1 @ w2 + b2

    a2 = g2 * jax.lax.rsqrt(v2 + EPS)          # (1, h2)
    c2 = be2 - m2 * a2
    w3f = a2.T * w3                            # (h2, 1) * (h2, out)
    b3f = c2 @ w3 + b3

    return [w1, b1, w2f, b2f, w3f, b3f]


# --------------------------------------------------------------------------
# Wrapper: adaptive batch tiling, remainder handling via zero-pad + slice.
# --------------------------------------------------------------------------
def _round_up(x, m):
    return ((x + m - 1) // m) * m


def task_head_forward(x, folded_params, output_dim, tile_b=None,
                      out_dtype=None):
    B, D_in = x.shape
    out_dtype = out_dtype or x.dtype

    if tile_b is None:
        # Mem-bound kernel: use large batch tiles to amortize per-grid-step
        # overhead, but keep grid >= 2 so megacore / both v7x TCs stay busy.
        # 1024 rows of f32 x at D_in=32 is ~128 KiB double-buffered -> fits
        # comfortably inside every generation's scoped-VMEM default.
        tile_b = max(8, min(1024, _round_up(pl.cdiv(B, 2), 8)))

    grid_b = pl.cdiv(B, tile_b)
    B_pad = grid_b * tile_b
    x_in = x if B_pad == B else jnp.pad(x, ((0, B_pad - B), (0, 0)))

    def param_spec(p):
        # Small resident full-tensor blocks (same block index every step).
        return pl.BlockSpec(p.shape, lambda i: (0, 0))

    in_specs = [pl.BlockSpec((tile_b, D_in), lambda i: (i, 0))] + \
               [param_spec(p) for p in folded_params]
    out_specs = pl.BlockSpec((tile_b, output_dim), lambda i: (i, 0))

    out = pl.pallas_call(
        task_head_kernel,
        out_shape=jax.ShapeDtypeStruct((B_pad, output_dim), out_dtype),
        grid=(grid_b,),
        in_specs=in_specs,
        out_specs=out_specs,
        compiler_params=pltpu.CompilerParams(
            dimension_semantics=("parallel",)),
    )(x_in, *folded_params)

    return out if B_pad == B else out[:B]


# --------------------------------------------------------------------------
# Plain-JAX reference using the UNFOLDED params (validates BN folding too).
# --------------------------------------------------------------------------
def task_head_reference(x, raw_params):
    p = list(raw_params)
    h = x.astype(jnp.float32)
    for _ in range(2):
        w, b, g, be, m, v = p[:6]
        p = p[6:]
        h = h @ w + b
        h = jnp.maximum(h, 0.0)
        h = (h - m) * jax.lax.rsqrt(v + EPS) * g + be
        # Dropout(p=0.1) eval mode == identity
    w, b = p
    return h @ w + b


if __name__ == "__main__":
    INPUT_DIM = 32
    OUTPUT_DIM = 8
    HIDDEN_DIMS = (64, 32)
    BATCH = 20  # deliberately not a multiple of the tile -> exercises padding

    key = jax.random.PRNGKey(0)
    kx, kp = jax.random.split(key)
    x = jax.random.normal(kx, (BATCH, INPUT_DIM), jnp.float32)
    raw_params = init_task_head_params(kp, INPUT_DIM, OUTPUT_DIM, HIDDEN_DIMS)
    folded = fold_batchnorm(raw_params)

    out = task_head_forward(x, folded, OUTPUT_DIM)
    out = jax.block_until_ready(out)

    ref = task_head_reference(x, raw_params)
    assert out.shape == (BATCH, OUTPUT_DIM), out.shape
    assert jnp.allclose(out, ref, atol=1e-4, rtol=1e-4), "mismatch vs reference"

    print("KERNEL_OK")
</pallas_src>

<mosaic_0001>
module attributes {stable_mosaic.version = 11 : i64} {
  func.func @task_head_kernel(%arg0: i32, %arg1: memref<16x32xf32, #tpu.memory_space<vmem>>, %arg2: memref<32x64xf32, #tpu.memory_space<vmem>>, %arg3: memref<1x64xf32, #tpu.memory_space<vmem>>, %arg4: memref<64x32xf32, #tpu.memory_space<vmem>>, %arg5: memref<1x32xf32, #tpu.memory_space<vmem>>, %arg6: memref<32x8xf32, #tpu.memory_space<vmem>>, %arg7: memref<1x8xf32, #tpu.memory_space<vmem>>, %arg8: memref<16x8xf32, #tpu.memory_space<vmem>>) attributes {dimension_semantics = [#tpu.dimension_semantics<parallel>], iteration_bounds = array<i64: 2>, scalar_prefetch = 0 : i64, scratch_operands = 0 : i64, tpu.core_type = #tpu.core_type<tc>, window_params = [{transform_indices = @transform_0, window_bounds = array<i64: 16, 32>}, {pipeline_mode = #tpu.pipeline_mode<synchronous>, transform_indices = @transform_1, window_bounds = array<i64: 32, 64>}, {pipeline_mode = #tpu.pipeline_mode<synchronous>, transform_indices = @transform_2, window_bounds = array<i64: 1, 64>}, {pipeline_mode = #tpu.pipeline_mode<synchronous>, transform_indices = @transform_3, window_bounds = array<i64: 64, 32>}, {pipeline_mode = #tpu.pipeline_mode<synchronous>, transform_indices = @transform_4, window_bounds = array<i64: 1, 32>}, {pipeline_mode = #tpu.pipeline_mode<synchronous>, transform_indices = @transform_5, window_bounds = array<i64: 32, 8>}, {pipeline_mode = #tpu.pipeline_mode<synchronous>, transform_indices = @transform_6, window_bounds = array<i64: 1, 8>}, {transform_indices = @transform_7, window_bounds = array<i64: 16, 8>}]} {
    %c0 = arith.constant 0 : index
    %c0_0 = arith.constant 0 : index
    %0 = vector.load %arg1[%c0, %c0_0] : memref<16x32xf32, #tpu.memory_space<vmem>>, vector<16x32xf32>
    %c0_1 = arith.constant 0 : index
    %c0_2 = arith.constant 0 : index
    %1 = vector.load %arg2[%c0_1, %c0_2] : memref<32x64xf32, #tpu.memory_space<vmem>>, vector<32x64xf32>
    %cst = arith.constant dense<0.000000e+00> : vector<16x64xf32>
    %2 = tpu.matmul %0, %1, %cst {dimension_numbers = #tpu.dot_dimension_numbers<[1], [0], [0], [1], [0, 0, 1, 1], [], []>} : vector<16x32xf32>, vector<32x64xf32>, vector<16x64xf32> -> vector<16x64xf32>
    %c0_3 = arith.constant 0 : index
    %c0_4 = arith.constant 0 : index
    %3 = vector.load %arg3[%c0_3, %c0_4] : memref<1x64xf32, #tpu.memory_space<vmem>>, vector<1x64xf32>
    %4 = vector.broadcast %3 : vector<1x64xf32> to vector<16x64xf32>
    %5 = arith.addf %2, %4 : vector<16x64xf32>
    %cst_5 = arith.constant 0.000000e+00 : f32
    %6 = vector.broadcast %cst_5 : f32 to vector<16x64xf32>
    %7 = arith.maximumf %5, %6 : vector<16x64xf32>
    %c0_6 = arith.constant 0 : index
    %c0_7 = arith.constant 0 : index
    %8 = vector.load %arg4[%c0_6, %c0_7] : memref<64x32xf32, #tpu.memory_space<vmem>>, vector<64x32xf32>
    %cst_8 = arith.constant dense<0.000000e+00> : vector<16x32xf32>
    %9 = tpu.matmul %7, %8, %cst_8 {dimension_numbers = #tpu.dot_dimension_numbers<[1], [0], [0], [1], [0, 0, 1, 1], [], []>} : vector<16x64xf32>, vector<64x32xf32>, vector<16x32xf32> -> vector<16x32xf32>
    %c0_9 = arith.constant 0 : index
    %c0_10 = arith.constant 0 : index
    %10 = vector.load %arg5[%c0_9, %c0_10] : memref<1x32xf32, #tpu.memory_space<vmem>>, vector<1x32xf32>
    %11 = vector.broadcast %10 : vector<1x32xf32> to vector<16x32xf32>
    %12 = arith.addf %9, %11 : vector<16x32xf32>
    %cst_11 = arith.constant 0.000000e+00 : f32
    %13 = vector.broadcast %cst_11 : f32 to vector<16x32xf32>
    %14 = arith.maximumf %12, %13 : vector<16x32xf32>
    %c0_12 = arith.constant 0 : index
    %c0_13 = arith.constant 0 : index
    %15 = vector.load %arg6[%c0_12, %c0_13] : memref<32x8xf32, #tpu.memory_space<vmem>>, vector<32x8xf32>
    %cst_14 = arith.constant dense<0.000000e+00> : vector<16x8xf32>
    %16 = tpu.matmul %14, %15, %cst_14 {dimension_numbers = #tpu.dot_dimension_numbers<[1], [0], [0], [1], [0, 0, 1, 1], [], []>} : vector<16x32xf32>, vector<32x8xf32>, vector<16x8xf32> -> vector<16x8xf32>
    %c0_15 = arith.constant 0 : index
    %c0_16 = arith.constant 0 : index
    %17 = vector.load %arg7[%c0_15, %c0_16] : memref<1x8xf32, #tpu.memory_space<vmem>>, vector<1x8xf32>
    %18 = vector.broadcast %17 : vector<1x8xf32> to vector<16x8xf32>
    %19 = arith.addf %16, %18 : vector<16x8xf32>
    %c0_17 = arith.constant 0 : index
    %c0_18 = arith.constant 0 : index
    %20 = vector.load %arg8[%c0_17, %c0_18] : memref<16x8xf32, #tpu.memory_space<vmem>>, vector<16x8xf32>
    tpu.vector_store %arg8[%c0_17, %c0_18], %19 {strides = array<i32>} : memref<16x8xf32, #tpu.memory_space<vmem>>, vector<16x8xf32>,
    return
  }
  func.func @transform_0(%arg0: i32) -> (i32, i32) {
    %c0_i32 = arith.constant 0 : i32
    %c0_i32_0 = arith.constant 0 : i32
    return %arg0, %c0_i32 : i32, i32
  }
  func.func @transform_1(%arg0: i32) -> (i32, i32) {
    %c0_i32 = arith.constant 0 : i32
    %c0_i32_0 = arith.constant 0 : i32
    %c0_i32_1 = arith.constant 0 : i32
    return %c0_i32, %c0_i32_0 : i32, i32
  }
  func.func @transform_2(%arg0: i32) -> (i32, i32) {
    %c0_i32 = arith.constant 0 : i32
    %c0_i32_0 = arith.constant 0 : i32
    %c0_i32_1 = arith.constant 0 : i32
    return %c0_i32, %c0_i32_0 : i32, i32
  }
  func.func @transform_3(%arg0: i32) -> (i32, i32) {
    %c0_i32 = arith.constant 0 : i32
    %c0_i32_0 = arith.constant 0 : i32
    %c0_i32_1 = arith.constant 0 : i32
    return %c0_i32, %c0_i32_0 : i32, i32
  }
  func.func @transform_4(%arg0: i32) -> (i32, i32) {
    %c0_i32 = arith.constant 0 : i32
    %c0_i32_0 = arith.constant 0 : i32
    %c0_i32_1 = arith.constant 0 : i32
    return %c0_i32, %c0_i32_0 : i32, i32
  }
  func.func @transform_5(%arg0: i32) -> (i32, i32) {
    %c0_i32 = arith.constant 0 : i32
    %c0_i32_0 = arith.constant 0 : i32
    %c0_i32_1 = arith.constant 0 : i32
    return %c0_i32, %c0_i32_0 : i32, i32
  }
  func.func @transform_6(%arg0: i32) -> (i32, i32) {
    %c0_i32 = arith.constant 0 : i32
    %c0_i32_0 = arith.constant 0 : i32
    %c0_i32_1 = arith.constant 0 : i32
    return %c0_i32, %c0_i32_0 : i32, i32
  }
  func.func @transform_7(%arg0: i32) -> (i32, i32) {
    %c0_i32 = arith.constant 0 : i32
    %c0_i32_0 = arith.constant 0 : i32
    return %arg0, %c0_i32 : i32, i32
  }
}

</mosaic_0001>

<bundles_post_ra>
// kernel: tpu_custom_call.1
= control target key start
LH: loop header
LB: loop body
LE: loop exit
PB: predicated region body
PF: predicated region fallthrough
CT: control target
= control target key end

     0   :  { %s548_s24 = smov 0   ;;  %s633_s0 = inlined_call_operand.vmem [shape: f32[32,32], index: 0, kind: input, shape index: {}]   ;;  %s634_s1 = inlined_call_operand.vmem [shape: f32[32,64], index: 1, kind: input, shape index: {}]   ;;  %s635_s2 = inlined_call_operand.vmem [shape: f32[1,64], index: 2, kind: input, shape index: {}]   ;;  %s636_s3 = inlined_call_operand.vmem [shape: f32[64,32], index: 3, kind: input, shape index: {}]   ;;  %s637_s4 = inlined_call_operand.vmem [shape: f32[1,32], index: 4, kind: input, shape index: {}]   ;;  %s638_s5 = inlined_call_operand.vmem [shape: f32[32,8], index: 5, kind: input, shape index: {}]   ;;  %s639_s6 = inlined_call_operand.vmem [shape: f32[1,8], index: 6, kind: input, shape index: {}]   ;;  %s640_s7 = inlined_call_operand.vmem [shape: f32[32,8], index: 7, kind: output, shape index: {}]  }
   0x1 LB: > { %s464_s25 = sadd.s32 4294967295, %s506_s24   ;;  %p468_p0 = scmp.ge.s32.totalorder %s506_s24, 1  ;;  %s506_s24 = sphi %s548_s24, %s17_s24  }
   0x2   : > { %p238_p1 = scmp.lt.s32.totalorder %s506_s24, 3 }
   0x4   : > { %p239_p2 = pnand %p468_p0, %p238_p1 }
   0x5   : > { %s469_s30 = sshll.u32 (!%p239_p2), %s464_s25, 1 }
   0x6   : > { %242 = sbr.rel (%p239_p2) target bundleno = 428 (0x1ac), region = 48  ;;  %p271_p3 = scmp.lt.s32.totalorder (!%p239_p2), %s469_s30, 3 }
   0xb   : > { %v287_v0 = vld [vmem:[%s634_s1 + $0x18] sm:$0xff]  ;;  %v286_v1 = vld [vmem:[%s634_s1 + $0x10] sm:$0xff]  ;;  %v285_v4 = vld [vmem:[%s634_s1 + $0x8] sm:$0xff]  ;;  %s642_s30 = smov (!%p271_p3, %s469_s30), 3  ;;  %vm292_vm0 = vcmask 261120   ;;  %vm336_vm1 = vcmask 523264  }
   0xc   : > { %311 = vmatpush.msra.mxu0 %v287_v0  ;;  %v331_v2 = vld [vmem:[%s636_s3 + $0x38] sm:$0xff]  ;;  %v330_v3 = vld [vmem:[%s636_s3 + $0x30] sm:$0xff]  ;;  %v329_v5 = vld [vmem:[%s636_s3 + $0x28] sm:$0xff]  ;;  %s470_s18 = sshll.u32 %s642_s30, 3  ;;  %vm405_vm2 = vcmask 64512  }
   0xd   : > { %351 = vmatpush.msra.mxu1 %v331_v2  ;;  %481 = vmatpush.msra.mxu3 %v331_v2  ;;  %v284_v6 = vld [vmem:[%s634_s1] sm:$0xff]  ;;  %s274_s23 = scalar_lea.vmem %s633_s0, %s470_s18  ;;  %v327_v9 = vld [vmem:[%s636_s3 + $0x18] sm:$0xff]  ;;  %v326_v11 = vld [vmem:[%s636_s3 + $0x10] sm:$0xff]  ;;  %s280_s29 = scalar_lea.vmem %s640_s7, %s470_s18 }
   0xe   : > { %312 = vmatpush.msra.mxu0 %v286_v1  ;;  %v328_v7 = vld [vmem:[%s636_s3 + $0x20] sm:$0xff]  ;;  %v283_v10 = vld [vmem:[%s274_s23 + $0x8] sm:$0xff]  ;;  %v371_v14 = vld [vmem:[%s638_s5 + $0x18] sm:$0xff] }
   0xf   : > { %352 = vmatpush.msra.mxu1 %v330_v3  ;;  %482 = vmatpush.msra.mxu3 %v330_v3  ;;  %v282_v8 = vld [vmem:[%s274_s23] sm:$0xff]  ;;  %v325_v12 = vld [vmem:[%s636_s3 + $0x8] sm:$0xff]  ;;  %v370_v22 = vld [vmem:[%s638_s5 + $0x10] sm:$0xff] }
  0x10   : > { %313 = vmatpush.msra.mxu0 %v285_v4  ;;  %v324_v13 = vld [vmem:[%s636_s3] sm:$0xff]  ;;  %394 = vmatpush.msra.mxu2 %v371_v14  ;;  %v369_v23 = vld [vmem:[%s638_s5 + $0x8] sm:$0xff] }
  0x11   : > { %353 = vmatpush.msra.mxu1 %v329_v5  ;;  %483 = vmatpush.msra.mxu3 %v329_v5  ;;  %v497_v15 = vld [vmem:[%s635_s2] ss:$0 sm:$0xff] }
  0x12   : > { %314 = vmatpush.msra.mxu0 %v284_v6  ;;  %395 = vmatpush.msra.mxu2 %v370_v22  ;;  %v368_v24 = vld [vmem:[%s638_s5] sm:$0xff] }
  0x13   : > { %473 = vmatmul.msk.f32.vlgmr.msra.gmra.mxu0 %vm292_vm0, %v282_v8  ;;  %354 = vmatpush.msra.mxu1 %v328_v7  ;;  %v498_v25 = vld [vmem:[%s637_s4] ss:$0 sm:$0xff] }
  0x14   : > { %484 = vmatpush.msra.mxu3 %v328_v7  ;;  %396 = vmatpush.msra.mxu2 %v369_v23  ;;  %v499_v32 = vld [vmem:[%s639_s6] ss:$0 sm:$0xff] }
  0x15   : > { %355 = vmatpush.msra.mxu1 %v327_v9 }
  0x16   : > { %485 = vmatpush.msra.mxu3 %v327_v9  ;;  %397 = vmatpush.msra.mxu2 %v368_v24 }
  0x17   : > { %356 = vmatpush.msra.mxu1 %v326_v11 }
  0x18   : > { %486 = vmatpush.msra.mxu3 %v326_v11 }
  0x19   : > { %357 = vmatpush.msra.mxu1 %v325_v12 }
  0x1a   : > { %487 = vmatpush.msra.mxu3 %v325_v12 }
  0x1b   : > { %474 = vmatmul.msk.f32.gmra.mxu0 %vm292_vm0, %v283_v10  ;;  %358 = vmatpush.msra.mxu1 %v324_v13 }
  0x1c   : > { %488 = vmatpush.msra.mxu3 %v324_v13 }
  0x90   : > { %v316_v16 = vpop.f32.mrf.mxu0 }
  0x91   : > { %v317_v17 = vadd.f32 %v497_v15, %v316_v16 }
  0x93   : > { %v322_v18 = vmax.f32 %v317_v17, 0.0 }
  0x95   : > { %475 = vmatmul.msk.f32.vlgmr.msra.gmra.mxu1 %vm336_vm1, %v322_v18 }
  0x98   : > { %v319_v19 = vpop.f32.mrf.mxu0 }
  0x99   : > { %v320_v20 = vadd.f32 %v497_v15, %v319_v19 }
  0x9b   : > { %v323_v21 = vmax.f32 %v320_v20, 0.0 }
  0x9d   : > { %476 = vmatmul.msk.f32.vlgmr.msra.gmra.mxu3 %vm336_vm1, %v323_v21 }
 0x112   : > { %v360_v26 = vpop.f32.mrf.mxu1 }
 0x113   : > { %v361_v27 = vadd.f32 %v498_v25, %v360_v26 }
 0x115   : > { %v366_v28 = vmax.f32 %v361_v27, 0.0 }
 0x117   : > { %477 = vmatmul.msk.f32.vlgmr.msra.gmra.mxu2 %vm292_vm0, %v366_v28 }
 0x120   : > { %v363_v29 = vpop.f32.mrf.mxu3 }
 0x121   : > { %v364_v30 = vadd.f32 %v498_v25, %v363_v29 }
 0x123   : > { %v367_v31 = vmax.f32 %v364_v30, 0.0 }
 0x125   : > { %478 = vmatmul.msk.f32.gmra.mxu2 %vm292_vm0, %v367_v31 }
 0x19a   : > { %v399_v33 = vpop.f32.mrf.mxu2 }
 0x19b   : > { %v400_v34 = vadd.f32 %v499_v32, %v399_v33 }
 0x19d   : > { %406 = vst.msk [vmem:[%s280_s29] sm:$0xff] %vm405_vm2, %v400_v34 }
 0x1a8   : > { %v402_v35 = vpop.f32.mrf.mxu2 }
 0x1a9   : > { %v403_v36 = vadd.f32 %v499_v32, %v402_v35 }
 0x1ab   : > { %407 = vst.msk [vmem:[%s280_s29 + $0x8] sm:$0xff] %vm405_vm2, %v403_v36 }
 0x1ac PF: > { %s17_s24 = sadd.s32 1, %s506_s24  }
 0x1ad   : > { %p14_p4 = scmp.ge.s32.totalorder %s17_s24, 4  }
 0x1af   :  { %16 = sbr.rel (!%p14_p4) target bundleno = 1 (0x1), region = 78 }

</bundles_post_ra>
